<compile_context>
chip_gen: v7x
topology: tpu7x:2x2x1
jax: 0.10.0
libtpu: 0.0.40
codegen_flags: <defaults>
</compile_context>

<pallas_src>
import functools

import jax
import jax.numpy as jnp
from jax import lax
from jax.experimental import pallas as pl
from jax.experimental.pallas import tpu as pltpu

LEAKY_RATE = 0.1
WEIGHTNET_OUT = 16   # W: WeightNet output channels

_SEM2 = pltpu.CompilerParams(dimension_semantics=("parallel", "parallel"))


def _leaky(x):
    return jnp.where(x > 0, x, LEAKY_RATE * x)


def _lane_tile(n, target=256):
    """Largest divisor of n that is <= target and a multiple of 128 (else n)."""
    if n <= target:
        return n
    t = target - (target % 128)
    while t >= 128:
        if n % t == 0:
            return t
        t -= 128
    return n


def _row_tile(n, target):
    """Largest divisor of n that is <= target and a multiple of 8 (else n)."""
    if n <= target:
        return n
    t = (target // 8) * 8
    while t >= 8:
        if n % t == 0:
            return t
        t -= 8
    return n


# ---------------------------------------------------------------------------
# Kernel 1: KNN scores.  score[n, m] = 2*<x_n, x_m> - |x_m|^2  (= -dist + const
# per row, so top_k(score) == K nearest).  Pure VPU, N on lanes, row-tiled.
# ---------------------------------------------------------------------------
def _neg_sqdist_kernel(xrow_ref, xcolT_ref, out_ref):
    xc = xcolT_ref[...]                                   # [3, N]
    ssq = xc[0:1, :] * xc[0:1, :] + xc[1:2, :] * xc[1:2, :] + xc[2:3, :] * xc[2:3, :]
    xr = xrow_ref[...]                                    # [tr, 3]
    acc = xr[:, 0:1] * xc[0:1, :]
    acc = acc + xr[:, 1:2] * xc[1:2, :]
    acc = acc + xr[:, 2:3] * xc[2:3, :]
    out_ref[...] = 2.0 * acc - ssq                        # [tr, N]


def pairwise_neg_sqdist(xyz_nc, xyz_cn, tr):
    B, N, _ = xyz_nc.shape
    return pl.pallas_call(
        _neg_sqdist_kernel,
        out_shape=jax.ShapeDtypeStruct((B, N, N), jnp.float32),
        grid=(B, N // tr),
        in_specs=[
            pl.BlockSpec((None, tr, 3), lambda b, r: (b, r, 0)),
            pl.BlockSpec((None, 3, N), lambda b, r: (b, 0, 0)),
        ],
        out_specs=pl.BlockSpec((None, tr, N), lambda b, r: (b, r, 0)),
        compiler_params=_SEM2,
    )(xyz_nc, xyz_cn)


# ---------------------------------------------------------------------------
# Kernel 2: fused PointConv.
#   gx_ref : [3, K, tn]   relative xyz for WeightNet (channel-major)
#   g_ref  : [K, Cp, tn]  grouped [xyz_norm ; feats] (zero-padded to Cp, k-major)
#   acc    : [W*Cp, tn]   scratch, flat index = w*Cp + c (weights pre-permuted)
# ---------------------------------------------------------------------------
def _pointconv_fused_kernel(gx_ref, g_ref, w1_ref, b1_ref, w2_ref, b2_ref,
                            w3_ref, b3_ref, lw_ref, lb_ref, sc_ref, sh_ref,
                            out_ref, acc_ref, *, cin, nk, wout):
    # ---- WeightNet: 1x1-conv MLP 3 -> 8 -> 8 -> wout (ReLU) on [K, tn] planes;
    #      tiny weights live in SMEM and are consumed as scalars.
    def wn_layer(planes, w_ref, b_ref, n_in, n_out):
        outs = []
        for o in range(n_out):
            s = planes[0] * w_ref[o, 0]
            for c in range(1, n_in):
                s = s + planes[c] * w_ref[o, c]
            outs.append(jnp.maximum(s + b_ref[o], 0.0))
        return outs

    gx_planes = [gx_ref[c] for c in range(3)]             # each [K, tn]
    h = wn_layer(gx_planes, w1_ref, b1_ref, 3, 8)
    h = wn_layer(h, w2_ref, b2_ref, 8, 8)
    wgt = wn_layer(h, w3_ref, b3_ref, 8, wout)            # wout planes of [K, tn]

    # ---- Neighbor contraction (K=9) as unrolled VPU FMAs, lane-dense in n:
    #      acc[w*cin + c, n] = sum_k g[k, c, n] * wgt[w][k, n]
    CC = 32                                               # channel chunk (register budget)
    for w in range(wout):
        pw = wgt[w]                                       # [K, tn]
        for c0 in range(0, cin, CC):
            cc = min(CC, cin - c0)
            s = g_ref[0, c0:c0 + cc, :] * pw[0:1, :]
            for k in range(1, nk):
                s = s + g_ref[k, c0:c0 + cc, :] * pw[k:k + 1, :]
            acc_ref[w * cin + c0:w * cin + c0 + cc, :] = s

    # ---- PointConv linear as one deep MXU matmul + folded BN (eval) + LeakyReLU.
    y = jnp.dot(lw_ref[...], acc_ref[...], preferred_element_type=jnp.float32)
    y = y + lb_ref[...]
    y = y * sc_ref[...] + sh_ref[...]
    out_ref[...] = _leaky(y)                              # [Cout, tn], lane-dense store


def pointconv_fused(gx, g, pc, lin_wT, tn):
    B, K, Cp, N = g.shape
    Cout = lin_wT.shape[0]
    F = WEIGHTNET_OUT * Cp
    smem = pl.BlockSpec(memory_space=pltpu.MemorySpace.SMEM)
    kern = functools.partial(_pointconv_fused_kernel, cin=Cp, nk=K, wout=WEIGHTNET_OUT)
    return pl.pallas_call(
        kern,
        out_shape=jax.ShapeDtypeStruct((B, Cout, N), jnp.float32),
        grid=(B, N // tn),
        in_specs=[
            pl.BlockSpec((None, 3, K, tn), lambda b, n: (b, 0, 0, n)),    # gx
            pl.BlockSpec((None, K, Cp, tn), lambda b, n: (b, 0, 0, n)),   # grouped feats
            smem, smem, smem, smem, smem, smem,                           # WeightNet params
            pl.BlockSpec((Cout, F), lambda b, n: (0, 0)),                 # permuted linear W^T
            pl.BlockSpec((Cout, 1), lambda b, n: (0, 0)),                 # linear bias
            pl.BlockSpec((Cout, 1), lambda b, n: (0, 0)),                 # BN scale (folded)
            pl.BlockSpec((Cout, 1), lambda b, n: (0, 0)),                 # BN shift (folded)
        ],
        out_specs=pl.BlockSpec((None, Cout, tn), lambda b, n: (b, 0, n)),
        scratch_shapes=[pltpu.VMEM((F, tn), jnp.float32)],
        compiler_params=_SEM2,
    )(gx, g, pc['wn_w1'], pc['wn_b1'], pc['wn_w2'], pc['wn_b2'],
      pc['wn_w3'], pc['wn_b3'], lin_wT, pc['lin_b'], pc['bn_scale'], pc['bn_shift'])


# ---------------------------------------------------------------------------
# Kernel 3: Conv1d MLP tail (LeakyReLU) + fc + clamp + flow residual.
# ---------------------------------------------------------------------------
def _flow_head_kernel(x_ref, w1_ref, b1_ref, w2_ref, b2_ref, wf_ref, bf_ref,
                      flow_ref, feat_ref, flow_out_ref, *, clamp_lo, clamp_hi):
    h = jnp.dot(w1_ref[...], x_ref[...], preferred_element_type=jnp.float32) + b1_ref[...]
    h = _leaky(h)
    h = jnp.dot(w2_ref[...], h, preferred_element_type=jnp.float32) + b2_ref[...]
    h = _leaky(h)
    feat_ref[...] = h
    fl = jnp.dot(wf_ref[...], h, preferred_element_type=jnp.float32) + bf_ref[...]
    fl = jnp.clip(fl, clamp_lo, clamp_hi)
    flow_out_ref[...] = fl + flow_ref[...]


def flow_head(points_cn, flow_cn, tail, clamp, tn):
    B, C, N = points_cn.shape
    H1 = tail['mlp1_w'].shape[0]
    H2 = tail['mlp2_w'].shape[0]
    kern = functools.partial(_flow_head_kernel,
                             clamp_lo=float(clamp[0]), clamp_hi=float(clamp[1]))
    feat, flow_out = pl.pallas_call(
        kern,
        out_shape=(jax.ShapeDtypeStruct((B, H2, N), jnp.float32),
                   jax.ShapeDtypeStruct((B, 3, N), jnp.float32)),
        grid=(B, N // tn),
        in_specs=[
            pl.BlockSpec((None, C, tn), lambda b, n: (b, 0, n)),
            pl.BlockSpec((H1, C), lambda b, n: (0, 0)),
            pl.BlockSpec((H1, 1), lambda b, n: (0, 0)),
            pl.BlockSpec((H2, H1), lambda b, n: (0, 0)),
            pl.BlockSpec((H2, 1), lambda b, n: (0, 0)),
            pl.BlockSpec((3, H2), lambda b, n: (0, 0)),
            pl.BlockSpec((3, 1), lambda b, n: (0, 0)),
            pl.BlockSpec((None, 3, tn), lambda b, n: (b, 0, n)),
        ],
        out_specs=(pl.BlockSpec((None, H2, tn), lambda b, n: (b, 0, n)),
                   pl.BlockSpec((None, 3, tn), lambda b, n: (b, 0, n))),
        compiler_params=_SEM2,
    )(points_cn, tail['mlp1_w'], tail['mlp1_b'], tail['mlp2_w'], tail['mlp2_b'],
      tail['fc_w'], tail['fc_b'], flow_cn)
    return feat, flow_out


# ---------------------------------------------------------------------------
# Parameter init (deterministic, synthetic — shapes mirror the module __init__).
# ---------------------------------------------------------------------------
def init_params(key, feat_ch, cost_ch, channels=(64, 64), mlp=(64, 32),
                neighbors=9, weightnet=16, clamp=(-200.0, 200.0)):
    keys = iter(jax.random.split(key, 64))

    def unif(shape, fan_in):
        b = 1.0 / float(fan_in) ** 0.5
        return jax.random.uniform(next(keys), shape, jnp.float32, -b, b)

    pointconvs = []
    last = feat_ch + cost_ch
    for ch_out in channels:
        cin = last + 3
        pc = {
            # WeightNet 1x1 convs: weight [out, in], bias [out] (SMEM scalars in-kernel).
            'wn_w1': unif((8, 3), 3),             'wn_b1': unif((8,), 3),
            'wn_w2': unif((8, 8), 8),             'wn_b2': unif((8,), 8),
            'wn_w3': unif((weightnet, 8), 8),     'wn_b3': unif((weightnet,), 8),
            # PointConv linear stored [F, Cout] with flat F index = c*16 + w
            # (matches torch's .view(B, N, -1) flatten order).
            'lin_w': unif((weightnet * cin, ch_out), weightnet * cin),
            'lin_b': unif((ch_out, 1), weightnet * cin),
        }
        gamma = 1.0 + 0.1 * jax.random.normal(next(keys), (ch_out, 1), jnp.float32)
        beta = 0.1 * jax.random.normal(next(keys), (ch_out, 1), jnp.float32)
        r_mean = 0.05 * jax.random.normal(next(keys), (ch_out, 1), jnp.float32)
        r_var = 1.0 + 0.1 * jnp.abs(jax.random.normal(next(keys), (ch_out, 1), jnp.float32))
        scale = gamma * lax.rsqrt(r_var + 1e-5)
        pc['bn_scale'] = scale
        pc['bn_shift'] = beta - r_mean * scale
        pointconvs.append(pc)
        last = ch_out

    assert len(mlp) == 2
    tail = {
        'mlp1_w': unif((mlp[0], last), last),       'mlp1_b': unif((mlp[0], 1), last),
        'mlp2_w': unif((mlp[1], mlp[0]), mlp[0]),   'mlp2_b': unif((mlp[1], 1), mlp[0]),
        'fc_w': unif((3, mlp[1]), mlp[1]),          'fc_b': unif((3, 1), mlp[1]),
    }
    return {'neighbors': neighbors, 'clamp': clamp,
            'pointconvs': pointconvs, 'tail': tail}


# ---------------------------------------------------------------------------
# Full forward (PyTorch layout in/out: [B, C, N]).
# ---------------------------------------------------------------------------
def scene_flow_estimator_residual(params, xyz_bcn, feats_bcn, cost_bcn, flow_bcn=None):
    f32 = jnp.float32
    xyz_cn = xyz_bcn.astype(f32)                              # [B, 3, N]
    B, _, N = xyz_cn.shape
    K = params['neighbors']
    W = WEIGHTNET_OUT

    tn = _lane_tile(N, 256)                                   # lane tile for compute kernels
    row_target = max(8, min(256, (2 * 1024 * 1024) // max(4 * N, 1)))
    tr = _row_tile(N, row_target)                             # row tile for the KNN scores

    xyz_nc = jnp.transpose(xyz_cn, (0, 2, 1))                 # [B, N, 3]

    # --- KNN: scores in Pallas, top-k selection + gather kept as XLA glue.
    #     The same xyz feeds every PointConv layer, so the index (and grouped
    #     relative xyz) are computed once and reused — identical to per-layer torch.
    neg = pairwise_neg_sqdist(xyz_nc, xyz_cn, tr)             # [B, N, N]
    _, idx = lax.top_k(neg, K)                                # [B, N, K] (K nearest)
    idx_kn = jnp.transpose(idx, (0, 2, 1))                    # [B, K, N]

    gxyz = jnp.take_along_axis(xyz_cn[:, None, :, :], idx_kn[:, :, None, :], axis=3)
    gxyz_norm = gxyz - xyz_cn[:, None, :, :]                  # [B, K, 3, N]
    gx = jnp.transpose(gxyz_norm, (0, 2, 1, 3))               # [B, 3, K, N] (WeightNet layout)

    points_cn = jnp.concatenate([feats_bcn, cost_bcn], axis=1).astype(f32)  # [B, C0, N]

    for pc in params['pointconvs']:
        D = points_cn.shape[1]
        Cin = D + 3
        Cp = ((Cin + 7) // 8) * 8                             # pad channels -> aligned sublanes
        Cout = pc['lin_w'].shape[1]

        gpts = jnp.take_along_axis(points_cn[:, None, :, :], idx_kn[:, :, None, :],
                                   axis=3)                    # [B, K, D, N]
        parts = [gxyz_norm, gpts]
        if Cp > Cin:
            parts.append(jnp.zeros((B, K, Cp - Cin, N), f32))
        g = jnp.concatenate(parts, axis=2)                    # [B, K, Cp, N]

        # Repack the linear weight to the kernel's (w-major, channel-padded) order:
        #   lin_wT[o, w*Cp + c] = lin_w[c*W + w, o]   (zero rows for padded channels)
        w3 = pc['lin_w'].reshape(Cin, W, Cout)
        w3 = jnp.pad(w3, ((0, Cp - Cin), (0, 0), (0, 0)))
        lin_wT = jnp.transpose(jnp.transpose(w3, (1, 0, 2)).reshape(W * Cp, Cout))  # [Cout, W*Cp]

        points_cn = pointconv_fused(gx, g, pc, lin_wT, tn)    # [B, Cout, N]

    flow_cn = (jnp.zeros((B, 3, N), f32) if flow_bcn is None else flow_bcn.astype(f32))
    feat_cn, flow_out_cn = flow_head(points_cn, flow_cn, params['tail'],
                                     params['clamp'], tn)
    return feat_cn, flow_out_cn                               # already [B, C, N]


if __name__ == "__main__":
    key = jax.random.PRNGKey(0)
    k_in, k_par = jax.random.split(key)

    B, N = 2, 64
    feat_ch, cost_ch = 16, 16
    channels, mlp, neighbors = (64, 64), (64, 32), 9

    kx, kf, kc, kfl = jax.random.split(k_in, 4)
    xyz = jax.random.normal(kx, (B, 3, N), jnp.float32)
    feats = jax.random.normal(kf, (B, feat_ch, N), jnp.float32)
    cost_volume = jax.random.normal(kc, (B, cost_ch, N), jnp.float32)
    flow = 0.1 * jax.random.normal(kfl, (B, 3, N), jnp.float32)

    params = init_params(k_par, feat_ch, cost_ch, channels=channels, mlp=mlp,
                         neighbors=neighbors)

    new_points_out, flow_out = scene_flow_estimator_residual(
        params, xyz, feats, cost_volume, flow)
    jax.block_until_ready((new_points_out, flow_out))

    assert new_points_out.shape == (B, mlp[-1], N)
    assert flow_out.shape == (B, 3, N)
    assert jnp.all(jnp.isfinite(new_points_out)) and jnp.all(jnp.isfinite(flow_out))
    print("KERNEL_OK")
</pallas_src>

<mosaic_0001>
module attributes {stable_mosaic.version = 11 : i64} {
  func.func @_neg_sqdist_kernel(%arg0: i32, %arg1: i32, %arg2: memref<1x64x3xf32, #tpu.memory_space<vmem>>, %arg3: memref<1x3x64xf32, #tpu.memory_space<vmem>>, %arg4: memref<1x64x64xf32, #tpu.memory_space<vmem>>) attributes {dimension_semantics = [#tpu.dimension_semantics<parallel>, #tpu.dimension_semantics<parallel>], iteration_bounds = array<i64: 2, 1>, scalar_prefetch = 0 : i64, scratch_operands = 0 : i64, tpu.core_type = #tpu.core_type<tc>, window_params = [{transform_indices = @transform_0, window_bounds = array<i64: 1, 64, 3>}, {transform_indices = @transform_1, window_bounds = array<i64: 1, 3, 64>}, {transform_indices = @transform_2, window_bounds = array<i64: 1, 64, 64>}]} {
    %c0 = arith.constant 0 : index
    %c0_0 = arith.constant 0 : index
    %c0_1 = arith.constant 0 : index
    %0 = vector.load %arg3[%c0, %c0_0, %c0_1] : memref<1x3x64xf32, #tpu.memory_space<vmem>>, vector<1x3x64xf32>
    %1 = vector.shape_cast %0 : vector<1x3x64xf32> to vector<3x64xf32>
    %2 = vector.extract_strided_slice %1 {offsets = [0, 0], sizes = [1, 64], strides = [1, 1]} : vector<3x64xf32> to vector<1x64xf32>
    %3 = vector.extract_strided_slice %1 {offsets = [0, 0], sizes = [1, 64], strides = [1, 1]} : vector<3x64xf32> to vector<1x64xf32>
    %4 = arith.mulf %2, %3 : vector<1x64xf32>
    %5 = vector.extract_strided_slice %1 {offsets = [1, 0], sizes = [1, 64], strides = [1, 1]} : vector<3x64xf32> to vector<1x64xf32>
    %6 = vector.extract_strided_slice %1 {offsets = [1, 0], sizes = [1, 64], strides = [1, 1]} : vector<3x64xf32> to vector<1x64xf32>
    %7 = arith.mulf %5, %6 : vector<1x64xf32>
    %8 = arith.addf %4, %7 : vector<1x64xf32>
    %9 = vector.extract_strided_slice %1 {offsets = [2, 0], sizes = [1, 64], strides = [1, 1]} : vector<3x64xf32> to vector<1x64xf32>
    %10 = vector.extract_strided_slice %1 {offsets = [2, 0], sizes = [1, 64], strides = [1, 1]} : vector<3x64xf32> to vector<1x64xf32>
    %11 = arith.mulf %9, %10 : vector<1x64xf32>
    %12 = arith.addf %8, %11 : vector<1x64xf32>
    %c0_2 = arith.constant 0 : index
    %c0_3 = arith.constant 0 : index
    %c0_4 = arith.constant 0 : index
    %13 = vector.load %arg2[%c0_2, %c0_3, %c0_4] : memref<1x64x3xf32, #tpu.memory_space<vmem>>, vector<1x64x3xf32>
    %14 = vector.shape_cast %13 : vector<1x64x3xf32> to vector<64x3xf32>
    %15 = vector.extract_strided_slice %14 {offsets = [0, 0], sizes = [64, 1], strides = [1, 1]} : vector<64x3xf32> to vector<64x1xf32>
    %16 = vector.extract_strided_slice %1 {offsets = [0, 0], sizes = [1, 64], strides = [1, 1]} : vector<3x64xf32> to vector<1x64xf32>
    %17 = vector.broadcast %15 : vector<64x1xf32> to vector<64x64xf32>
    %18 = vector.broadcast %16 : vector<1x64xf32> to vector<64x64xf32>
    %19 = arith.mulf %17, %18 : vector<64x64xf32>
    %20 = vector.extract_strided_slice %14 {offsets = [0, 1], sizes = [64, 1], strides = [1, 1]} : vector<64x3xf32> to vector<64x1xf32>
    %21 = vector.extract_strided_slice %1 {offsets = [1, 0], sizes = [1, 64], strides = [1, 1]} : vector<3x64xf32> to vector<1x64xf32>
    %22 = vector.broadcast %20 : vector<64x1xf32> to vector<64x64xf32>
    %23 = vector.broadcast %21 : vector<1x64xf32> to vector<64x64xf32>
    %24 = arith.mulf %22, %23 : vector<64x64xf32>
    %25 = arith.addf %19, %24 : vector<64x64xf32>
    %26 = vector.extract_strided_slice %14 {offsets = [0, 2], sizes = [64, 1], strides = [1, 1]} : vector<64x3xf32> to vector<64x1xf32>
    %27 = vector.extract_strided_slice %1 {offsets = [2, 0], sizes = [1, 64], strides = [1, 1]} : vector<3x64xf32> to vector<1x64xf32>
    %28 = vector.broadcast %26 : vector<64x1xf32> to vector<64x64xf32>
    %29 = vector.broadcast %27 : vector<1x64xf32> to vector<64x64xf32>
    %30 = arith.mulf %28, %29 : vector<64x64xf32>
    %31 = arith.addf %25, %30 : vector<64x64xf32>
    %cst = arith.constant 2.000000e+00 : f32
    %32 = vector.broadcast %cst : f32 to vector<64x64xf32>
    %33 = arith.mulf %32, %31 : vector<64x64xf32>
    %34 = vector.broadcast %12 : vector<1x64xf32> to vector<64x64xf32>
    %35 = arith.subf %33, %34 : vector<64x64xf32>
    %c0_5 = arith.constant 0 : index
    %c0_6 = arith.constant 0 : index
    %c0_7 = arith.constant 0 : index
    %36 = vector.load %arg4[%c0_5, %c0_6, %c0_7] : memref<1x64x64xf32, #tpu.memory_space<vmem>>, vector<1x64x64xf32>
    %37 = vector.shape_cast %36 : vector<1x64x64xf32> to vector<64x64xf32>
    %38 = vector.shape_cast %35 : vector<64x64xf32> to vector<1x64x64xf32>
    tpu.vector_store %arg4[%c0_5, %c0_6, %c0_7], %38 {strides = array<i32>} : memref<1x64x64xf32, #tpu.memory_space<vmem>>, vector<1x64x64xf32>,
    return
  }
  func.func @transform_0(%arg0: i32, %arg1: i32) -> (i32, i32, i32) {
    %c0_i32 = arith.constant 0 : i32
    %c0_i32_0 = arith.constant 0 : i32
    return %arg0, %arg1, %c0_i32 : i32, i32, i32
  }
  func.func @transform_1(%arg0: i32, %arg1: i32) -> (i32, i32, i32) {
    %c0_i32 = arith.constant 0 : i32
    %c0_i32_0 = arith.constant 0 : i32
    %c0_i32_1 = arith.constant 0 : i32
    return %arg0, %c0_i32, %c0_i32_0 : i32, i32, i32
  }
  func.func @transform_2(%arg0: i32, %arg1: i32) -> (i32, i32, i32) {
    %c0_i32 = arith.constant 0 : i32
    %c0_i32_0 = arith.constant 0 : i32
    return %arg0, %arg1, %c0_i32 : i32, i32, i32
  }
}

</mosaic_0001>

<bundles_post_ra>
// kernel: tpu_custom_call.1
= control target key start
LH: loop header
LB: loop body
LE: loop exit
PB: predicated region body
PF: predicated region fallthrough
CT: control target
= control target key end

     0   :  { %7 = vsyncpa [#allocation3], 0  ;;  %s873_s0 = inlined_call_operand.vmem [shape: f32[2,64,3], index: 0, kind: input, shape index: {}]   ;;  %s874_s1 = inlined_call_operand.vmem [shape: f32[2,3,64], index: 1, kind: input, shape index: {}]   ;;  %s875_s2 = inlined_call_operand.hbm [shape: f32[2,64,64], index: 2, kind: output, shape index: {}]  }
   0x1   :  { %9 = vsyncpa [#allocation3 + $0x1], 0  ;;  %s682_s9 = smov 0   ;;  %s684_s10 = smov 0  }
   0x2   :  { %s686_s11 = smov 0   ;;  %s688_s12 = smov 0  }
   0x3   :  { %s690_s13 = smov 0   ;;  %s692_s14 = smov 0  }
   0x4 LB: > { %s499_s15 = sadd.s32 4294967295, %s659_s14   ;;  %s500_s16 = sadd.s32 4294967294, %s659_s14   ;;  %s659_s14 = sphi %s692_s14, %s15_s14   ;;  %s655_s13 = sphi %s690_s13, %s882_s13   ;;  %s651_s12 = sphi %s688_s12, %s881_s12   ;;  %s647_s11 = sphi %s686_s11, %s880_s11   ;;  %s643_s10 = sphi %s684_s10, %s879_s10   ;;  %s639_s9 = sphi %s682_s9, %s878_s9  }
   0x5   : > { %s27_s17 = sadd.s32 1, %s655_s13  ;;  %s90_s18 = sadd.s32 1, %s647_s11 }
   0x6   : > { %p29_p0 = scmp.ge.s32.totalorder %s27_s17, 2  ;;  %p100_p1 = scmp.ne.s32.totalorder %s647_s11, %s643_s10 }
   0x7   : > { %p101_p2 = scmp.eq.s32.totalorder %s499_s15, 1  ;;  %p106_p3 = scmp.ne.s32.totalorder %s643_s10, %s639_s9 }
   0x8   : > { %s884_s17 = smov (%p29_p0, %s27_s17), 0  ;;  %p107_p5 = scmp.eq.s32.totalorder %s500_s16, 1 }
   0x9   : > { %p722_p4 = por %p101_p2, %p100_p1  ;;  %s85_s20 = ssub.s32 %s655_s13, %s884_s17 }
   0xa   : > { %p503_p6 = scmp.ge.s32.totalorder %s659_s14, 1  ;;  %p88_p7 = scmp.eq.s32.totalorder %s85_s20, 0 }
   0xb   : > { %p729_p8 = por %p107_p5, %p106_p3  ;;  %p145_p9 = scmp.lt.s32.totalorder %s659_s14, 3 }
   0xc   : > { %s735_s22 = scalar_select %p88_p7, %s647_s11, %s90_s18  }
   0xd   : > { %p146_p10 = pnand %p503_p6, %p145_p9 }
   0xe   : > { %p176_p11 = scmp.lt.s32.totalorder (!%p146_p10), %s651_s12, 1  ;;  %v661_v0 = vmov (!%p146_p10), 0   ;;  %v662_v9 = vmov (!%p146_p10), 1   ;;  %v663_v10 = vmov (!%p146_p10), 2   ;;  %v247_v19 = vlaneseq (!%p146_p10)  ;;  %s172_s4 = sand.u32 (!%p146_p10), 1, %s643_s10  }
   0xf   : > { %149 = sbr.rel (%p146_p10) target bundleno = 228 (0xe4), region = 28  ;;  %576 = vset.pattern.permute.xlu1 (!%p146_p10), %v661_v0  ;;  %575 = vset.pattern.permute.xlu0 (!%p146_p10), %v661_v0  ;;  %s504_s5 = sshll.u32 (!%p146_p10), %s172_s4, 6  ;;  %vm383_vm0 = vcmask (!%p146_p10), 523264  }
  0x10   : > { %v248_v24 = vshrl.u32 (!%p146_p10), %v247_v19, 7  ;;  %s783_s6 = scalar_lea.vmem (!%p146_p10), [#allocation2], %s504_s5  ;;  %s514_s7 = sshll.u32 (!%p146_p10), %s651_s12, 10 }
  0x11   : > { %s408_s8 = sshll.u32 (!%p146_p10), %s783_s6, 4  ;;  %s818_s18 = scalar_lea.hbm (!%p146_p10), %s875_s2, %s514_s7  ;;  %s820_s8 = int_to_ptr.vmem [resolvable:$true] %s408_s8 }
  0x12   : > { %v293_v27 = vsub.s32 (!%p146_p10), 1, %v248_v24  ;;  %v249_v31 = vsub.s32 (!%p146_p10), 0, %v248_v24  ;;  %v345_v33 = vsub.s32 (!%p146_p10), 2, %v248_v24  ;;  %s581_s20 = scalar_lea.vmem (!%p146_p10), %s820_s8, 1024 }
  0x13   : > { %p582_p12 = scmp.ne.s32.totalorder (!%p146_p10), %s820_s8, %s581_s20 }
  0x15   : > { %p583_p13 = pnand (!%p146_p10), %p582_p12, %p722_p4 }
  0x16   : > { %s739_s23 = scalar_select %p176_p11, %s651_s12, 1 }
  0x17   : > { %s827_s12 = scalar_lea.sflag [#allocation3], %s172_s4  ;;  %p584_p0 = pneg %p583_p13 }
  0x18   : > { %s513_s24 = sshll.u32 %s739_s23, 6  ;;  %s507_s28 = sshll.u32 %s739_s23, 2 }
  0x19   : > { %s183_s27 = scalar_lea.vmem %s873_s0, %s513_s24  ;;  %s188_s3 = scalar_lea.vmem %s874_s1, %s507_s28 }
  0x1a   : > { %v201_v1 = vld [vmem:[%s183_s27 + $0x10] sm:$0xff]  ;;  %v199_v2 = vld [vmem:[%s183_s27] sm:$0xff]  ;;  %v202_v3 = vld [vmem:[%s183_s27 + $0x18] sm:$0xff]  ;;  %s664_s23 = smov [#allocation2]  }
  0x1b   : > { %219 = vperm.xlu1 %576, %v201_v1   ;;  %209 = vperm.xlu0 %575, %v199_v2   ;;  %v200_v4 = vld [vmem:[%s183_s27 + $0x8] sm:$0xff]  ;;  %v203_v6 = vld [vmem:[%s183_s27 + $0x20] sm:$0xff]  ;;  %v206_v7 = vld [vmem:[%s183_s27 + $0x38] sm:$0xff]  ;;  %s585_s24 = sshll.u32 %s664_s23, 4  ;;  %s586_s24 = int_to_ptr.vmem [resolvable:$false] %s585_s24 }
  0x1c   : > { %v204_v5 = vld [vmem:[%s183_s27 + $0x28] sm:$0xff]  ;;  %v205_v8 = vld [vmem:[%s183_s27 + $0x30] sm:$0xff]  ;;  %v190_v22 = vld [vmem:[%s188_s3] sm:$0x7]  ;;  %s587_s25 = scalar_lea.vmem %s586_s24, 2048  ;;  %p588_p1 = scmp.lt.s32.totalorder %s820_s8, %s586_s24 }
  0x1d   : > { %v191_v23 = vmul.f32 %v190_v22, %v190_v22  ;;  %v753_v32 = vrot.slane %v190_v22, %v293_v27  ;;  %v755_v38 = vrot.slane %v190_v22, %v249_v31  ;;  %v757_v39 = vrot.slane %v190_v22, %v345_v33  ;;  %p589_p2 = scmp.lt.s32.totalorder %s587_s25, %s581_s20 }
  0x1f   : > { %224 = vperm.xlu1 %576, %v202_v3   ;;  %214 = vperm.xlu0 %575, %v200_v4   ;;  %v193_v28 = vrot.slane %v191_v23, 1  ;;  %v196_v35 = vrot.slane %v191_v23, 2  ;;  %p590_p3 = por %p589_p2, %p588_p1 }
  0x21   : > { %v195_v34 = vadd.f32 %v193_v28, %v191_v23  ;;  %p591_p5 = pnand %p590_p3, %p584_p0 }
  0x23   : > { %234 = vperm.xlu1 %576, %v204_v5   ;;  %229 = vperm.xlu0 %575, %v203_v6   ;;  %v198_v42 = vadd.f32 %v196_v35, %v195_v34 }
  0x25   : > { %v768_v53 = vrot.slane %v198_v42, %v249_v31 }
  0x27   : > { %244 = vperm.xlu1 %576, %v206_v7   ;;  %239 = vperm.xlu0 %575, %v205_v8  }
  0x2b   : > { %578 = vset.pattern.permute.xlu1 %v662_v9  ;;  %577 = vset.pattern.permute.xlu0 %v662_v9 }
  0x2c   : > { %264 = vperm.xlu1 %578, %v200_v4   ;;  %260 = vperm.xlu0 %577, %v199_v2  }
  0x30   : > { %268 = vperm.xlu1 %578, %v201_v1   ;;  %272 = vperm.xlu0 %577, %v202_v3  }
  0x34   : > { %276 = vperm.xlu1 %578, %v203_v6   ;;  %280 = vperm.xlu0 %577, %v204_v5  }
  0x38   : > { %284 = vperm.xlu1 %578, %v205_v8   ;;  %288 = vperm.xlu0 %577, %v206_v7  }
  0x3c   : > { %579 = vset.pattern.permute.xlu1 %v663_v10  ;;  %580 = vset.pattern.permute.xlu0 %v663_v10 }
  0x3d   : > { %312 = vperm.xlu1 %579, %v199_v2   ;;  %316 = vperm.xlu0 %580, %v200_v4  }
  0x41   : > { %320 = vperm.xlu1 %579, %v201_v1   ;;  %328 = vperm.xlu0 %580, %v203_v6  }
  0x45   : > { %324 = vperm.xlu1 %579, %v202_v3   ;;  %336 = vperm.xlu0 %580, %v205_v8  }
  0x49   : > { %332 = vperm.xlu1 %579, %v204_v5  }
  0x4d   : > { %340 = vperm.xlu1 %579, %v206_v7  }
  0x9a   : > { %v220_v11 = vpop.permute.xlu1 %219  ;;  %v210_v12 = vpop.permute.xlu0 %209 }
  0x9b   : > { %v251_v43 = vmul.f32 %v755_v38, %v210_v12  ;;  %v253_v54 = vmul.f32 %v755_v38, %v220_v11 }
  0x9e   : > { %v225_v13 = vpop.permute.xlu1 %224  ;;  %v215_v14 = vpop.permute.xlu0 %214 }
  0x9f   : > { %v252_v44 = vmul.f32 %v755_v38, %v215_v14  ;;  %v254_v4 = vmul.f32 %v755_v38, %v225_v13 }
  0xa2   : > { %v745_v15 = vpop.permute.xlu1 %234  ;;  %v230_v16 = vpop.permute.xlu0 %229 }
  0xa3   : > { %v255_v56 = vmul.f32 %v755_v38, %v230_v16 }
  0xa6   : > { %v747_v17 = vpop.permute.xlu1 %244  ;;  %v240_v18 = vpop.permute.xlu0 %239 }
  0xa7   : > { %v257_v7 = vmul.f32 %v755_v38, %v240_v18  ;;  %v258_v31 = vmul.f32 %v755_v38, %v747_v17 }
  0xab   : > { %v265_v20 = vpop.permute.xlu1 %264  ;;  %v261_v21 = vpop.permute.xlu0 %260 }
  0xac   : > { %v295_v40 = vmul.f32 %v753_v32, %v261_v21  ;;  %v296_v41 = vmul.f32 %v753_v32, %v265_v20  ;;  %v256_v21 = vmul.f32 %v755_v38, %v745_v15 }
  0xae   : > { %v303_v46 = vadd.f32 %v295_v40, %v251_v43  ;;  %v304_v50 = vadd.f32 %v296_v41, %v252_v44 }
  0xaf   : > { %v269_v25 = vpop.permute.xlu1 %268  ;;  %v273_v26 = vpop.permute.xlu0 %272 }
  0xb0   : > { %v297_v47 = vmul.f32 %v753_v32, %v269_v25  ;;  %v298_v60 = vmul.f32 %v753_v32, %v273_v26 }
  0xb2   : > { %v305_v59 = vadd.f32 %v297_v47, %v253_v54  ;;  %v306_v11 = vadd.f32 %v298_v60, %v254_v4 }
  0xb3   : > { %v277_v29 = vpop.permute.xlu1 %276  ;;  %v281_v30 = vpop.permute.xlu0 %280 }
  0xb4   : > { %v299_v51 = vmul.f32 %v753_v32, %v277_v29  ;;  %v300_v12 = vmul.f32 %v753_v32, %v281_v30 }
  0xb6   : > { %v307_v0 = vadd.f32 %v299_v51, %v255_v56  ;;  %v308_v27 = vadd.f32 %v300_v12, %v256_v21 }
  0xb7   : > { %v285_v36 = vpop.permute.xlu1 %284  ;;  %v289_v37 = vpop.permute.xlu0 %288 }
  0xb8   : > { %v301_v1 = vmul.f32 %v753_v32, %v285_v36  ;;  %v302_v28 = vmul.f32 %v753_v32, %v289_v37 }
  0xba   : > { %v309_v18 = vadd.f32 %v301_v1, %v257_v7  ;;  %v310_v36 = vadd.f32 %v302_v28, %v258_v31 }
  0xbc   : > { %v313_v45 = vpop.permute.xlu1 %312  ;;  %v317_v49 = vpop.permute.xlu0 %316 }
  0xbd   : > { %v347_v48 = vmul.f32 %v757_v39, %v313_v45  ;;  %v348_v52 = vmul.f32 %v757_v39, %v317_v49 }
  0xbf   : > { %v355_v55 = vadd.f32 %v347_v48, %v303_v46  ;;  %v356_v57 = vadd.f32 %v348_v52, %v304_v50 }
  0xc0   : > { %v321_v58 = vpop.permute.xlu1 %320  ;;  %v329_v63 = vpop.permute.xlu0 %328 }
  0xc1   : > { %v363_v61 = vmul.f32 2.0, %v355_v55  ;;  %v349_v62 = vmul.f32 %v757_v39, %v321_v58  ;;  %v364_v2 = vmul.f32 2.0, %v356_v57  ;;  %v351_v3 = vmul.f32 %v757_v39, %v329_v63 }
  0xc3   : > { %v375_v5 = vsub.f32 %v363_v61, %v768_v53  ;;  %v357_v6 = vadd.f32 %v349_v62, %v305_v59  ;;  %v376_v8 = vsub.f32 %v364_v2, %v768_v53  ;;  %v359_v9 = vadd.f32 %v351_v3, %v307_v0 }
  0xc4   : > { %v325_v10 = vpop.permute.xlu1 %324  ;;  %v337_v16 = vpop.permute.xlu0 %336 }
  0xc5   : > { %384 = vst.msk [vmem:[%s783_s6] sm:$0xff] %vm383_vm0, %v375_v5  ;;  %v365_v13 = vmul.f32 2.0, %v357_v6  ;;  %v350_v14 = vmul.f32 %v757_v39, %v325_v10  ;;  %385 = vst.msk [vmem:[%s783_s6 + $0x8] sm:$0xff] %vm383_vm0, %v376_v8  ;;  %v367_v19 = vmul.f32 2.0, %v359_v9  ;;  %v353_v20 = vmul.f32 %v757_v39, %v337_v16 }
  0xc7   : > { %v377_v22 = vsub.f32 %v365_v13, %v768_v53  ;;  %v358_v23 = vadd.f32 %v350_v14, %v306_v11  ;;  %v379_v24 = vsub.f32 %v367_v19, %v768_v53  ;;  %v361_v25 = vadd.f32 %v353_v20, %v309_v18 }
  0xc8   : > { %v333_v26 = vpop.permute.xlu1 %332 }
  0xc9   : > { %386 = vst.msk [vmem:[%s783_s6 + $0x10] sm:$0xff] %vm383_vm0, %v377_v22  ;;  %v366_v29 = vmul.f32 2.0, %v358_v23  ;;  %v352_v30 = vmul.f32 %v757_v39, %v333_v26  ;;  %388 = vst.msk [vmem:[%s783_s6 + $0x20] sm:$0xff] %vm383_vm0, %v379_v24  ;;  %v369_v15 = vmul.f32 2.0, %v361_v25 }
  0xcb   : > { %v378_v33 = vsub.f32 %v366_v29, %v768_v53  ;;  %v360_v34 = vadd.f32 %v352_v30, %v308_v27  ;;  %v381_v35 = vsub.f32 %v369_v15, %v768_v53 }
  0xcc   : > { %v341_v32 = vpop.permute.xlu1 %340 }
  0xcd   : > { %387 = vst.msk [vmem:[%s783_s6 + $0x18] sm:$0xff] %vm383_vm0, %v378_v33  ;;  %v368_v37 = vmul.f32 2.0, %v360_v34  ;;  %v354_v40 = vmul.f32 %v757_v39, %v341_v32  ;;  %390 = vst.msk [vmem:[%s783_s6 + $0x30] sm:$0xff] %vm383_vm0, %v381_v35 }
  0xcf   : > { %v380_v41 = vsub.f32 %v368_v37, %v768_v53  ;;  %v362_v17 = vadd.f32 %v354_v40, %v310_v36 }
  0xd1   : > { %389 = vst.msk [vmem:[%s783_s6 + $0x28] sm:$0xff] %vm383_vm0, %v380_v41  ;;  %v370_v38 = vmul.f32 2.0, %v362_v17 }
  0xd3   : > { %v382_v39 = vsub.f32 %v370_v38, %v768_v53 }
  0xd5   : > { %391 = vst.msk [vmem:[%s783_s6 + $0x38] sm:$0xff] %vm383_vm0, %v382_v39 }
  0xd6   : > { %594 = shalt.err (!%p591_p5)
}
  0xd7   : > { %s595_s26 = scalar_lea.hbm %s818_s18, 1024  ;;  %s599_s29 = scalar_lea.hbm %s875_s2, 2048 }
  0xd8   : > { %p596_p6 = scmp.ne.s32.totalorder %s818_s18, %s595_s26  ;;  %p600_p10 = scmp.lt.u32.totalorder %s818_s18, %s875_s2 }
  0xd9   : > { %p601_p11 = scmp.lt.u32.totalorder %s599_s29, %s595_s26  ;;  %p603_p13 = scmp.lt.u32.totalorder %s595_s26, %s818_s18 }
  0xda   : > { %p597_p7 = pnand %p596_p6, %p722_p4 }
  0xdb   : > { %p602_p12 = por %p601_p11, %p600_p10 }
  0xdc   : > { %p598_p9 = pneg %p597_p7 }
  0xdd   : > { %p604_p0 = por %p603_p13, %p602_p12 }
  0xdf   : > { %p605_p1 = pnand %p604_p0, %p598_p9 }
  0xe1   : > { %608 = shalt.err (!%p605_p1)
}
  0xe2   : > { %s665_s4 = smov 128   ;;  %s666_s5 = smov 8  }
  0xe3   : > { %515 = dma.vmem_to_hbm [thread:$0]  (%p722_p4), %s820_s8, 1024, %s818_s18, %s827_s12, %s665_s4, %s665_s4, %s666_s5  }
  0xe4 PF: > { %p521_p2 = scmp.ge.s32.totalorder %s659_s14, 2  ;;  %s423_s6 = sand.u32 1, %s639_s9  }
  0xe5   : > { %s424_s7 = scalar_lea.sflag [#allocation3], %s423_s6 }
  0xe6   : > { %p518_p3 = pnand %p521_p2, %p729_p8 }
  0xe8   : > { %634 = dma.done.wait (!%p518_p3), %s424_s7, 1024  }
  0xe9   : > { %636 = vsyncadd (!%p518_p3), %s424_s7, 4294966272  ;;  %s15_s14 = sadd.s32 1, %s659_s14   ;;  %s878_s9 = smov %s643_s10 }
  0xea   : > { %p12_p5 = scmp.ge.s32.totalorder %s15_s14, 4   ;;  %s879_s10 = smov %s647_s11 }
  0xeb   : > { %s880_s11 = smov %s735_s22  ;;  %s881_s12 = smov %s655_s13 }
  0xec   : > { %s882_s13 = smov %s884_s17  ;;  %14 = sbr.rel (!%p12_p5) target bundleno = 4 (0x4), region = 66 }
  0xf3   :  { %429 = vsyncpa [#allocation3], 1 }
  0xf4   :  { %431 = vsyncpa [#allocation3 + $0x1], 1 }

</bundles_post_ra>
